<compile_context>
chip_gen: v6e
topology: v6e:2x2x1
jax: 0.10.0
libtpu: 0.0.40
codegen_flags: <defaults>
</compile_context>

<pallas_src>
import jax
import jax.numpy as jnp
from jax import lax
from jax.experimental import pallas as pl
from jax.experimental.pallas import tpu as pltpu


def _round_up(x, m):
    return ((x + m - 1) // m) * m


def policy_net_kernel(x_ref, w1_ref, b1_ref, w2_ref, b2_ref, w3t_ref, b3t_ref, out_ref):
    # x: (tb, S) bf16 row tile (pipelined); weights/biases resident in VMEM
    # (constant index_maps). Matmuls: bf16 operands, f32 accumulation.
    x = x_ref[...]

    # fc1 + relu
    h1 = jnp.dot(x, w1_ref[...], preferred_element_type=jnp.float32) + b1_ref[...]
    h1 = jnp.maximum(h1, 0.0).astype(jnp.bfloat16)

    # fc2 + relu
    h2 = jnp.dot(h1, w2_ref[...], preferred_element_type=jnp.float32) + b2_ref[...]
    h2 = jnp.maximum(h2, 0.0).astype(jnp.bfloat16)

    # fc3 directly in transposed (A, tb) layout:
    #   logits_t[a, b] = sum_h w3t[a, h] * h2[b, h]   (trans_b matmul on the MXU)
    logits_t = lax.dot_general(
        w3t_ref[...], h2,
        dimension_numbers=(((1,), (1,)), ((), ())),
        preferred_element_type=jnp.float32,
    ) + b3t_ref[...]

    # Numerically stable softmax over the action axis (axis 0, only A rows).
    m = jnp.max(logits_t, axis=0, keepdims=True)
    e = jnp.exp(logits_t - m)
    denom = jnp.sum(e, axis=0, keepdims=True)
    out_ref[...] = e / denom  # exact normalization: rows sum to 1


def prepare_params(params):
    """One-time kernel-layout parameter prep (hoisted out of the per-call path)."""
    return {
        "w1": params["w1"].astype(jnp.bfloat16),                   # (S, H)
        "b1": params["b1"].reshape(1, -1).astype(jnp.float32),     # (1, H)
        "w2": params["w2"].astype(jnp.bfloat16),                   # (H, H)
        "b2": params["b2"].reshape(1, -1).astype(jnp.float32),     # (1, H)
        "w3t": params["w3"].T.astype(jnp.bfloat16),                # (A, H)
        "b3t": params["b3"].reshape(-1, 1).astype(jnp.float32),    # (A, 1)
    }


def _pick_tiling(B, row_tile):
    """Balanced, padding-aware row tiling.

    Multi-tile => tb is a multiple of 128 so the transposed (A, tb) output blocks
    stay lane-aligned; single-tile => tb covers the (8-rounded) batch exactly.
    """
    B8 = _round_up(B, 8)
    n_tiles = pl.cdiv(B8, row_tile)
    if n_tiles > 1:
        tb = _round_up(pl.cdiv(B8, n_tiles), 128)
        n_tiles = pl.cdiv(B8, tb)
        return n_tiles, tb
    tb = B8
    if B8 >= 256:
        # v7x megacore: prefer >=2 parallel grid steps if padding stays small.
        tb2 = _round_up(pl.cdiv(B8, 2), 128)
        if 2 * tb2 - B8 <= B8 // 8:
            return 2, tb2
    return 1, tb


def policy_network_forward(x, prep, row_tile=1024):
    """x: (B, state_size). prep: output of prepare_params(). Returns (B, action_size)."""
    B, S = x.shape
    H = prep["w1"].shape[1]
    A = prep["w3t"].shape[0]

    n_tiles, tb = _pick_tiling(B, row_tile)
    Bp = n_tiles * tb

    xb = x.astype(jnp.bfloat16)          # halve the x HBM read; MXU is fed bf16 anyway
    if Bp != B:
        xb = jnp.pad(xb, ((0, Bp - B), (0, 0)))

    out_t = pl.pallas_call(
        policy_net_kernel,
        out_shape=jax.ShapeDtypeStruct((A, Bp), jnp.float32),
        grid=(n_tiles,),
        in_specs=[
            pl.BlockSpec((tb, S), lambda i: (i, 0)),   # x row tile (pipelined)
            pl.BlockSpec((S, H), lambda i: (0, 0)),    # w1 (resident)
            pl.BlockSpec((1, H), lambda i: (0, 0)),    # b1
            pl.BlockSpec((H, H), lambda i: (0, 0)),    # w2
            pl.BlockSpec((1, H), lambda i: (0, 0)),    # b2
            pl.BlockSpec((A, H), lambda i: (0, 0)),    # w3^T (torch layout, no padding)
            pl.BlockSpec((A, 1), lambda i: (0, 0)),    # b3 column
        ],
        out_specs=pl.BlockSpec((A, tb), lambda i: (0, i)),  # lane-dense transposed output
        compiler_params=pltpu.CompilerParams(dimension_semantics=("parallel",)),
    )(xb, prep["w1"], prep["b1"], prep["w2"], prep["b2"], prep["w3t"], prep["b3t"])

    # Tiny (A, B) -> (B, A) slice+transpose back to the torch output layout.
    return out_t[:, :B].T


def init_params(key, state_size, action_size, hidden=128):
    """Deterministic init mimicking torch.nn.Linear default (uniform +-1/sqrt(fan_in))."""
    ks = jax.random.split(key, 6)

    def linear(kw, kb, fan_in, fan_out):
        bound = 1.0 / jnp.sqrt(fan_in)
        w = jax.random.uniform(kw, (fan_in, fan_out), jnp.float32, -bound, bound)
        b = jax.random.uniform(kb, (fan_out,), jnp.float32, -bound, bound)
        return w, b

    w1, b1 = linear(ks[0], ks[1], state_size, hidden)
    w2, b2 = linear(ks[2], ks[3], hidden, hidden)
    w3, b3 = linear(ks[4], ks[5], hidden, action_size)
    return {"w1": w1, "b1": b1, "w2": w2, "b2": b2, "w3": w3, "b3": b3}


def _reference(x, params):
    # Same math as the kernel (bf16 MXU operands, f32 accumulation), exact softmax.
    w1 = params["w1"].astype(jnp.bfloat16)
    w2 = params["w2"].astype(jnp.bfloat16)
    w3 = params["w3"].astype(jnp.bfloat16)
    h1 = jnp.maximum(jnp.dot(x.astype(jnp.bfloat16), w1,
                             preferred_element_type=jnp.float32) + params["b1"], 0.0)
    h2 = jnp.maximum(jnp.dot(h1.astype(jnp.bfloat16), w2,
                             preferred_element_type=jnp.float32) + params["b2"], 0.0)
    logits = jnp.dot(h2.astype(jnp.bfloat16), w3,
                     preferred_element_type=jnp.float32) + params["b3"]
    return jax.nn.softmax(logits, axis=1)


if __name__ == "__main__":
    key = jax.random.PRNGKey(0)
    state_size = 32
    action_size = 8
    batch = 4

    k_params, k_x, k_x2 = jax.random.split(key, 3)
    params = init_params(k_params, state_size, action_size)
    prep = prepare_params(params)

    # Small-batch case (single grid step, batch padded to 8 sublanes).
    x = jax.random.normal(k_x, (batch, state_size), dtype=jnp.float32)
    out = jax.block_until_ready(policy_network_forward(x, prep))
    ref = _reference(x, params)
    assert out.shape == (batch, action_size)
    assert jnp.allclose(out, ref, atol=1e-3, rtol=1e-3)
    assert jnp.allclose(jnp.sum(out, axis=1), 1.0, atol=1e-3)

    # Larger batch (exercises tiling choice + batch padding + output slice/transpose).
    x2 = jax.random.normal(k_x2, (300, state_size), dtype=jnp.float32)
    out2 = jax.block_until_ready(policy_network_forward(x2, prep))
    ref2 = _reference(x2, params)
    assert out2.shape == (300, action_size)
    assert jnp.allclose(out2, ref2, atol=1e-3, rtol=1e-3)
    assert jnp.allclose(jnp.sum(out2, axis=1), 1.0, atol=1e-3)

    print("KERNEL_OK")
</pallas_src>

<mosaic_0001>
module attributes {stable_mosaic.version = 11 : i64} {
  func.func @policy_net_kernel(%arg0: i32, %arg1: memref<8x32xbf16, #tpu.memory_space<vmem>>, %arg2: memref<32x128xbf16, #tpu.memory_space<vmem>>, %arg3: memref<1x128xf32, #tpu.memory_space<vmem>>, %arg4: memref<128x128xbf16, #tpu.memory_space<vmem>>, %arg5: memref<1x128xf32, #tpu.memory_space<vmem>>, %arg6: memref<8x128xbf16, #tpu.memory_space<vmem>>, %arg7: memref<8x1xf32, #tpu.memory_space<vmem>>, %arg8: memref<8x8xf32, #tpu.memory_space<vmem>>) attributes {dimension_semantics = [#tpu.dimension_semantics<parallel>], iteration_bounds = array<i64: 1>, scalar_prefetch = 0 : i64, scratch_operands = 0 : i64, tpu.core_type = #tpu.core_type<tc>, window_params = [{transform_indices = @transform_0, window_bounds = array<i64: 8, 32>}, {pipeline_mode = #tpu.pipeline_mode<synchronous>, transform_indices = @transform_1, window_bounds = array<i64: 32, 128>}, {pipeline_mode = #tpu.pipeline_mode<synchronous>, transform_indices = @transform_2, window_bounds = array<i64: 1, 128>}, {pipeline_mode = #tpu.pipeline_mode<synchronous>, transform_indices = @transform_3, window_bounds = array<i64: 128, 128>}, {pipeline_mode = #tpu.pipeline_mode<synchronous>, transform_indices = @transform_4, window_bounds = array<i64: 1, 128>}, {pipeline_mode = #tpu.pipeline_mode<synchronous>, transform_indices = @transform_5, window_bounds = array<i64: 8, 128>}, {pipeline_mode = #tpu.pipeline_mode<synchronous>, transform_indices = @transform_6, window_bounds = array<i64: 8, 1>}, {transform_indices = @transform_7, window_bounds = array<i64: 8, 8>}]} {
    %c0 = arith.constant 0 : index
    %c0_0 = arith.constant 0 : index
    %0 = vector.load %arg1[%c0, %c0_0] : memref<8x32xbf16, #tpu.memory_space<vmem>>, vector<8x32xbf16>
    %c0_1 = arith.constant 0 : index
    %c0_2 = arith.constant 0 : index
    %1 = vector.load %arg2[%c0_1, %c0_2] : memref<32x128xbf16, #tpu.memory_space<vmem>>, vector<32x128xbf16>
    %cst = arith.constant dense<0.000000e+00> : vector<8x128xf32>
    %2 = tpu.matmul %0, %1, %cst {dimension_numbers = #tpu.dot_dimension_numbers<[1], [0], [0], [1], [0, 0, 1, 1], [], []>} : vector<8x32xbf16>, vector<32x128xbf16>, vector<8x128xf32> -> vector<8x128xf32>
    %c0_3 = arith.constant 0 : index
    %c0_4 = arith.constant 0 : index
    %3 = vector.load %arg3[%c0_3, %c0_4] : memref<1x128xf32, #tpu.memory_space<vmem>>, vector<1x128xf32>
    %4 = vector.broadcast %3 : vector<1x128xf32> to vector<8x128xf32>
    %5 = arith.addf %2, %4 : vector<8x128xf32>
    %cst_5 = arith.constant 0.000000e+00 : f32
    %6 = vector.broadcast %cst_5 : f32 to vector<8x128xf32>
    %7 = arith.maximumf %5, %6 : vector<8x128xf32>
    %8 = arith.truncf %7 : vector<8x128xf32> to vector<8x128xbf16>
    %c0_6 = arith.constant 0 : index
    %c0_7 = arith.constant 0 : index
    %9 = vector.load %arg4[%c0_6, %c0_7] : memref<128x128xbf16, #tpu.memory_space<vmem>>, vector<128x128xbf16>
    %cst_8 = arith.constant dense<0.000000e+00> : vector<8x128xf32>
    %10 = tpu.matmul %8, %9, %cst_8 {dimension_numbers = #tpu.dot_dimension_numbers<[1], [0], [0], [1], [0, 0, 1, 1], [], []>} : vector<8x128xbf16>, vector<128x128xbf16>, vector<8x128xf32> -> vector<8x128xf32>
    %c0_9 = arith.constant 0 : index
    %c0_10 = arith.constant 0 : index
    %11 = vector.load %arg5[%c0_9, %c0_10] : memref<1x128xf32, #tpu.memory_space<vmem>>, vector<1x128xf32>
    %12 = vector.broadcast %11 : vector<1x128xf32> to vector<8x128xf32>
    %13 = arith.addf %10, %12 : vector<8x128xf32>
    %cst_11 = arith.constant 0.000000e+00 : f32
    %14 = vector.broadcast %cst_11 : f32 to vector<8x128xf32>
    %15 = arith.maximumf %13, %14 : vector<8x128xf32>
    %16 = arith.truncf %15 : vector<8x128xf32> to vector<8x128xbf16>
    %c0_12 = arith.constant 0 : index
    %c0_13 = arith.constant 0 : index
    %17 = vector.load %arg6[%c0_12, %c0_13] : memref<8x128xbf16, #tpu.memory_space<vmem>>, vector<8x128xbf16>
    %cst_14 = arith.constant dense<0.000000e+00> : vector<8x8xf32>
    %18 = tpu.matmul %17, %16, %cst_14 {dimension_numbers = #tpu.dot_dimension_numbers<[1], [1], [0], [0], [0, 0, 1, 0], [], []>} : vector<8x128xbf16>, vector<8x128xbf16>, vector<8x8xf32> -> vector<8x8xf32>
    %c0_15 = arith.constant 0 : index
    %c0_16 = arith.constant 0 : index
    %19 = vector.load %arg7[%c0_15, %c0_16] : memref<8x1xf32, #tpu.memory_space<vmem>>, vector<8x1xf32>
    %20 = vector.broadcast %19 : vector<8x1xf32> to vector<8x8xf32>
    %21 = arith.addf %18, %20 : vector<8x8xf32>
    %cst_17 = arith.constant dense<0xFF800000> : vector<8xf32>
    %22 = vector.multi_reduction <maximumf>, %21, %cst_17 [0] : vector<8x8xf32> to vector<8xf32>
    %23 = vector.shape_cast %22 : vector<8xf32> to vector<1x8xf32>
    %24 = vector.broadcast %23 : vector<1x8xf32> to vector<8x8xf32>
    %25 = arith.subf %21, %24 : vector<8x8xf32>
    %26 = math.exp %25 : vector<8x8xf32>
    %cst_18 = arith.constant dense<0.000000e+00> : vector<8xf32>
    %27 = vector.multi_reduction <add>, %26, %cst_18 [0] : vector<8x8xf32> to vector<8xf32>
    %28 = vector.shape_cast %27 : vector<8xf32> to vector<1x8xf32>
    %29 = vector.broadcast %28 : vector<1x8xf32> to vector<8x8xf32>
    %30 = arith.divf %26, %29 : vector<8x8xf32>
    %c0_19 = arith.constant 0 : index
    %c0_20 = arith.constant 0 : index
    %31 = vector.load %arg8[%c0_19, %c0_20] : memref<8x8xf32, #tpu.memory_space<vmem>>, vector<8x8xf32>
    tpu.vector_store %arg8[%c0_19, %c0_20], %30 {strides = array<i32>} : memref<8x8xf32, #tpu.memory_space<vmem>>, vector<8x8xf32>,
    return
  }
  func.func @transform_0(%arg0: i32) -> (i32, i32) {
    %c0_i32 = arith.constant 0 : i32
    %c0_i32_0 = arith.constant 0 : i32
    return %arg0, %c0_i32 : i32, i32
  }
  func.func @transform_1(%arg0: i32) -> (i32, i32) {
    %c0_i32 = arith.constant 0 : i32
    %c0_i32_0 = arith.constant 0 : i32
    %c0_i32_1 = arith.constant 0 : i32
    return %c0_i32, %c0_i32_0 : i32, i32
  }
  func.func @transform_2(%arg0: i32) -> (i32, i32) {
    %c0_i32 = arith.constant 0 : i32
    %c0_i32_0 = arith.constant 0 : i32
    %c0_i32_1 = arith.constant 0 : i32
    return %c0_i32, %c0_i32_0 : i32, i32
  }
  func.func @transform_3(%arg0: i32) -> (i32, i32) {
    %c0_i32 = arith.constant 0 : i32
    %c0_i32_0 = arith.constant 0 : i32
    %c0_i32_1 = arith.constant 0 : i32
    return %c0_i32, %c0_i32_0 : i32, i32
  }
  func.func @transform_4(%arg0: i32) -> (i32, i32) {
    %c0_i32 = arith.constant 0 : i32
    %c0_i32_0 = arith.constant 0 : i32
    %c0_i32_1 = arith.constant 0 : i32
    return %c0_i32, %c0_i32_0 : i32, i32
  }
  func.func @transform_5(%arg0: i32) -> (i32, i32) {
    %c0_i32 = arith.constant 0 : i32
    %c0_i32_0 = arith.constant 0 : i32
    %c0_i32_1 = arith.constant 0 : i32
    return %c0_i32, %c0_i32_0 : i32, i32
  }
  func.func @transform_6(%arg0: i32) -> (i32, i32) {
    %c0_i32 = arith.constant 0 : i32
    %c0_i32_0 = arith.constant 0 : i32
    %c0_i32_1 = arith.constant 0 : i32
    return %c0_i32, %c0_i32_0 : i32, i32
  }
  func.func @transform_7(%arg0: i32) -> (i32, i32) {
    %c0_i32 = arith.constant 0 : i32
    %c0_i32_0 = arith.constant 0 : i32
    return %c0_i32, %arg0 : i32, i32
  }
}

</mosaic_0001>

<bundles_post_ra>
// kernel: tpu_custom_call.1
= control target key start
LH: loop header
LB: loop body
LE: loop exit
PB: predicated region body
PF: predicated region fallthrough
CT: control target
= control target key end

     0   :  { %12 = vsyncpa [#allocation3], 0  ;;  %s551_s0 = inlined_call_operand.vmem [shape: bf16[8,32], index: 0, kind: input, shape index: {}]   ;;  %s552_s1 = inlined_call_operand.hbm [shape: bf16[32,128], index: 1, kind: input, shape index: {}]   ;;  %s553_s2 = inlined_call_operand.vmem [shape: f32[1,128], index: 2, kind: input, shape index: {}]   ;;  %s554_s3 = inlined_call_operand.hbm [shape: bf16[128,128], index: 3, kind: input, shape index: {}]   ;;  %s555_s4 = inlined_call_operand.vmem [shape: f32[1,128], index: 4, kind: input, shape index: {}]   ;;  %s556_s5 = inlined_call_operand.vmem [shape: bf16[8,128], index: 5, kind: input, shape index: {}]   ;;  %s557_s6 = inlined_call_operand.vmem [shape: f32[8,1], index: 6, kind: input, shape index: {}]   ;;  %s558_s7 = inlined_call_operand.hbm [shape: f32[8,8], index: 7, kind: output, shape index: {}]  }
   0x1   :  { %13 = vsyncpa [#allocation6], 0 }
   0x2   :  { %14 = vsyncpa [#allocation4], 0  ;;  %s473_s24 = smov [#allocation2]  }
   0x3   :  { %s22_s25 = sshll.u32 %s473_s24, 4  ;;  %s23_s25 = int_to_ptr.vmem [resolvable:$true] %s22_s25 }
   0x4   :  { %s415_s26 = scalar_lea.vmem %s23_s25, 256  ;;  %p420_p1 = scmp.lt.s32.totalorder %s23_s25, %s23_s25 }
   0x5   :  { %p416_p0 = scmp.ne.s32.totalorder %s23_s25, %s415_s26  ;;  %p421_p2 = scmp.lt.s32.totalorder %s415_s26, %s415_s26 }
   0x7   :  { %p422_p3 = por %p421_p2, %p420_p1 }
   0x9   :  { %p423_p4 = pnand %p422_p3, %p416_p0 }
   0xb   :  { %426 = shalt.err (!%p423_p4)
}
   0xc   :  { %s474_s27 = smov 64   ;;  %s475_s28 = smov 4  }
   0xd   :  { %28 = dma.hbm_to_vmem [thread:$0]  %s552_s1, 256, %s23_s25, [#allocation3], %s474_s27, %s474_s27, %s475_s28  }
   0xe   :  { %s476_s8 = smov [#allocation5]  }
   0xf   :  { %s36_s9 = sshll.u32 %s476_s8, 4  ;;  %s37_s9 = int_to_ptr.vmem [resolvable:$true] %s36_s9 }
  0x10   :  { %s435_s10 = scalar_lea.vmem %s37_s9, 1024  ;;  %p440_p6 = scmp.lt.s32.totalorder %s37_s9, %s37_s9 }
  0x11   :  { %p436_p5 = scmp.ne.s32.totalorder %s37_s9, %s435_s10  ;;  %p441_p7 = scmp.lt.s32.totalorder %s435_s10, %s435_s10 }
  0x13   :  { %p442_p8 = por %p441_p7, %p440_p6 }
  0x15   :  { %p443_p9 = pnand %p442_p8, %p436_p5 }
  0x17   :  { %446 = shalt.err (!%p443_p9)
}
  0x18   :  { %42 = dma.hbm_to_vmem [thread:$0]  %s554_s3, 1024, %s37_s9, [#allocation6], %s474_s27, %s474_s27, %s475_s28  }
  0x19   :  { %467 = dma.done.wait [#allocation3], 256  }
  0x1a   :  { %468 = vsyncadd [#allocation3], 4294967040 }
  0x1b   :  { %469 = dma.done.wait [#allocation6], 1024  }
  0x1c   :  { %470 = vsyncadd [#allocation6], 4294966272  ;;  %v477_v0 = vmov 0.0   ;;  %vm478_vm0 = vmmov 0   ;;  %v393_v1 = vld [vmem:[#allocation2 + $0x8] sm:$0xff]   ;;  %v394_v2 = vld [vmem:[#allocation2] sm:$0xff]  }
  0x1d   :  { %350 = vmatprep.subr.bf16.mxu0 %v477_v0  ;;  %354 = vmatprep.mubr.msk.bf16.mxu0 %vm478_vm0, %v477_v0  ;;  %v395_v3 = vld [vmem:[#allocation5 + $0x38] sm:$0xff]   ;;  %vm80_vm1 = vcmask 261120   ;;  %v396_v4 = vld [vmem:[#allocation5 + $0x30] sm:$0xff]   ;;  %v397_v6 = vld [vmem:[#allocation5 + $0x28] sm:$0xff]   ;;  %v479_v21 = vmov 0   ;;  %vm286_vm2 = vcmask 64512  }
  0x1e   :  { %358 = vmatprep.subr.bf16.mxu1 %v477_v0  ;;  %374 = vmatprep.mubr.msk.bf16.mxu1 %vm478_vm0, %v477_v0  ;;  %v56_v5 = vld [vmem:[%s551_s0] sm:$0xf]  ;;  %v398_v7 = vld [vmem:[#allocation5 + $0x20] sm:$0xff]   ;;  %v399_v8 = vld [vmem:[#allocation5 + $0x18] sm:$0xff]  }
  0x1f   :  { %351 = vmatpush3.bf16.msra.mxu0 %v393_v1  ;;  %359 = vmatpush3.bf16.msra.mxu1 %v395_v3  ;;  %v400_v9 = vld [vmem:[#allocation5 + $0x10] sm:$0xff]   ;;  %v401_v10 = vld [vmem:[#allocation5 + $0x8] sm:$0xff]   ;;  %v402_v11 = vld [vmem:[#allocation5] sm:$0xff]  }
  0x20   :  { %352 = vmatprep.subr.bf16.mxu0 %v477_v0  ;;  %360 = vmatprep.subr.bf16.mxu1 %v477_v0  ;;  %v323_v12 = vld [vmem:[%s553_s2] ss:$0 sm:$0xff] }
  0x21   :  { %v240_v20 = vld [vmem:[%s557_s6] sm:$0xff]  ;;  %392 = vset.pattern.permute.xlu0 %v479_v21 }
  0x22   :  { %243 = vperm.xlu0 %392, %v240_v20   ;;  %v327_v22 = vld [vmem:[%s555_s4] ss:$0 sm:$0xff]  ;;  %s480_s4 = smov [#allocation7]  }
  0x23   :  { %353 = vmatpush3.bf16.msra.mxu0 %v394_v2  ;;  %361 = vmatpush3.bf16.msra.mxu1 %v396_v4  ;;  %v239_v30 = vld [vmem:[%s556_s5] sm:$0xf]  ;;  %s313_s5 = sshll.u32 %s480_s4, 4  ;;  %s314_s5 = int_to_ptr.vmem [resolvable:$true] %s313_s5 }
  0x24   :  { %378 = vmatprep.subr.bf16.mxu0 %v477_v0  ;;  %362 = vmatprep.subr.bf16.mxu1 %v477_v0  ;;  %s447_s6 = scalar_lea.vmem %s314_s5, 128  ;;  %p452_p11 = scmp.lt.s32.totalorder %s314_s5, %s314_s5 }
  0x25   :  { %p448_p10 = scmp.ne.s32.totalorder %s314_s5, %s447_s6  ;;  %p453_p12 = scmp.lt.s32.totalorder %s447_s6, %s447_s6 }
  0x26   :  { %355 = vmatmul.mubr.msk.bf16.vlgmr.msra.gmra.mxu0 %vm80_vm1, %v56_v5 }
  0x27   :  { %380 = vmatprep.mubr.msk.bf16.mxu0 %vm478_vm0, %v477_v0  ;;  %363 = vmatpush3.bf16.msra.mxu1 %v397_v6  ;;  %p454_p13 = por %p453_p12, %p452_p11 }
  0x28   :  { %364 = vmatprep.subr.bf16.mxu1 %v477_v0 }
  0x29   :  { %p455_p0 = pnand %p454_p13, %p448_p10 }
  0x2b   :  { %365 = vmatpush3.bf16.msra.mxu1 %v398_v7 }
  0x2c   :  { %366 = vmatprep.subr.bf16.mxu1 %v477_v0 }
  0x2f   :  { %367 = vmatpush3.bf16.msra.mxu1 %v399_v8 }
  0x30   :  { %368 = vmatprep.subr.bf16.mxu1 %v477_v0 }
  0x33   :  { %369 = vmatpush3.bf16.msra.mxu1 %v400_v9 }
  0x34   :  { %370 = vmatprep.subr.bf16.mxu1 %v477_v0 }
  0x37   :  { %371 = vmatpush3.bf16.msra.mxu1 %v401_v10 }
  0x38   :  { %372 = vmatprep.subr.bf16.mxu1 %v477_v0 }
  0x3b   :  { %373 = vmatpush3.bf16.msra.mxu1 %v402_v11 }
  0x9d   :  { %v244_v31 = vpop.permute.xlu0 %243 }
  0xe6   :  { %v118_v13 = vpop.f32.mrf.mxu0 }
  0xe7   :  { %v119_v14 = vadd.f32 %v323_v12, %v118_v13 }
  0xe8   :  { %v356_v15 = vpop.f32.mrf.mxu0 }
  0xe9   :  { %v124_v16 = vmax.f32 %v119_v14, 0.0 }
  0xea   :  { %v121_v17 = vpop.f32.mrf.mxu0 }
  0xeb   :  { %v125_v18 = vpack.c.bf16 %v124_v16, %v124_v16 }
  0xec   :  { %v357_v19 = vpop.f32.mrf.mxu0 }
  0xed   :  { %375 = vmatmul.mubr.bf16.vlgmr.msra.gmra.mxu1 %v125_v18 }
 0x1ad   :  { %v231_v23 = vpop.f32.mrf.mxu1 }
 0x1ae   :  { %v232_v24 = vadd.f32 %v327_v22, %v231_v23 }
 0x1af   :  { %v376_v25 = vpop.f32.mrf.mxu1 }
 0x1b0   :  { %v237_v26 = vmax.f32 %v232_v24, 0.0 }
 0x1b1   :  { %v234_v27 = vpop.f32.mrf.mxu1 }
 0x1b2   :  { %v238_v28 = vpack.c.bf16 %v237_v26, %v237_v26 }
 0x1b3   :  { %v377_v29 = vpop.f32.mrf.mxu1 }
 0x1b4   :  { %379 = vmatpush3.bf16.xpose.msra.mxu0 %v238_v28 }
 0x1bb   :  { %381 = vmatmul.mubr.bf16.vlgmr.msra.gmra.mxu0 %v239_v30 }
 0x27b   :  { %v280_v32 = vpop.f32.mrf.mxu0 }
 0x27c   :  { %v281_v33 = vadd.f32 %v280_v32, %v244_v31 }
 0x27d   :  { %v382_v34 = vpop.f32.mrf.mxu0 }
 0x27e   :  { %v287_v35 = vsel %vm286_vm2, %v281_v33, -inf }
 0x27f   :  { %v288_v36 = vrot.slane %v287_v35, 4  ;;  %v283_v37 = vpop.f32.mrf.mxu0 }
 0x281   :  { %v289_v38 = vmax.f32 %v287_v35, %v288_v36  ;;  %v383_v39 = vpop.f32.mrf.mxu0 }
 0x283   :  { %v290_v40 = vrot.slane %v289_v38, 2 }
 0x285   :  { %v291_v41 = vmax.f32 %v289_v38, %v290_v40 }
 0x287   :  { %v292_v42 = vrot.slane %v291_v41, 1 }
 0x289   :  { %v293_v43 = vmax.f32 %v291_v41, %v292_v42 }
 0x28b   :  { %v294_v44 = vsub.f32 %v281_v33, %v293_v43 }
 0x28d   :  { %v295_v45 = vmul.f32 1.442695, %v294_v44 }
 0x28f   :  { %403 = vpow2.f32 %v295_v45 }
 0x29c   :  { %v404_v46 = vpop.eup %403 }
 0x29d   :  { %v297_v47 = vsel %vm286_vm2, %v404_v46, 0.0 }
 0x29e   :  { %v298_v48 = vrot.slane %v297_v47, 4 }
 0x2a0   :  { %v299_v49 = vadd.f32 %v298_v48, %v297_v47 }
 0x2a2   :  { %v300_v50 = vrot.slane %v299_v49, 2 }
 0x2a4   :  { %v301_v51 = vadd.f32 %v300_v50, %v299_v49 }
 0x2a6   :  { %v302_v52 = vrot.slane %v301_v51, 1 }
 0x2a8   :  { %v303_v53 = vadd.f32 %v302_v52, %v301_v51 }
 0x2aa   :  { %405 = vrcp.f32 %v303_v53 }
 0x2b7   :  { %v406_v54 = vpop.eup %405 }
 0x2b8   :  { %v305_v55 = vmul.f32 %v406_v54, %v404_v46 }
 0x2ba   :  { %306 = vst.msk [vmem:[#allocation7] sm:$0xff] %vm286_vm2, %v305_v55 }
 0x2bb   :  { %458 = shalt.err (!%p455_p0)
}
 0x2bc   :  { %316 = dma.vmem_to_hbm [thread:$0]  %s314_s5, 128, %s558_s7, [#allocation4]  }
 0x2bd   :  { %471 = dma.done.wait [#allocation4], 128  }
 0x2be   :  { %472 = vsyncadd [#allocation4], 4294967168 }
 0x2bf   :  { %320 = vsyncpa [#allocation3], 1 }
 0x2c0   :  { %321 = vsyncpa [#allocation6], 1 }
 0x2c1   :  { %322 = vsyncpa [#allocation4], 1 }

</bundles_post_ra>
